<compile_context>
chip_gen: v7x
topology: tpu7x:2x2x1
jax: 0.10.0
libtpu: 0.0.40
codegen_flags: <defaults>
</compile_context>

<pallas_src>
import functools

import jax
import jax.numpy as jnp
from jax.experimental import pallas as pl
from jax.experimental.pallas import tpu as pltpu


def _multiarm_kernel(x_ref, wt_ref, b_ref, out_ref):
    # x_ref block: (PT, C, hw1) in the caller's dtype.
    x = x_ref[...]
    xf = x.astype(jnp.float32)
    hw = xf.shape[-1]

    # AdaptiveAvgPool2d((1, 1)) per patch -> mean over flattened spatial axis.
    pooled = jnp.sum(xf, axis=-1) * (1.0 / hw)                    # (PT, C) f32

    # Conv2d(C, C, kernel_size=1) on a 1x1 map == (PT, C) @ (C_in, C_out).
    z = jnp.dot(pooled, wt_ref[...], preferred_element_type=jnp.float32)
    z = z + b_ref[...]                                            # (PT, C) + (1, C)
    atte = jax.nn.sigmoid(z)                                      # (PT, C) f32

    # Channel-wise scale broadcast over the patch spatial extent; multiply in
    # fp32 (v5e has no bf16 VPU), store back in the caller's dtype.
    out_ref[...] = (xf * atte[:, :, None]).astype(out_ref.dtype)


def _pick_patch_tile(num_patches, per_patch_block_bytes, budget_bytes=2 << 20):
    """Largest divisor of num_patches whose x-block stays under the VMEM budget."""
    max_pt = max(1, budget_bytes // max(per_patch_block_bytes, 1))
    pt = 1
    for d in range(1, num_patches + 1):
        if num_patches % d == 0 and d <= max_pt:
            pt = d
    return pt


@functools.partial(jax.jit, static_argnames=("split_num",))
def multiarm_sync_forward(x, w, b, split_num):
    """x: (B, C, H, W); w: (C, C) 1x1-conv weight (C_out, C_in); b: (C,)."""
    B, C, H, W = x.shape
    S = split_num
    h1, w1 = H // S, W // S
    hw1 = h1 * w1
    P = B * S * S

    # PyTorch's forward only covers S*h1 x S*w1 (any remainder is dropped).
    xc = x[:, :, : S * h1, : S * w1]
    # (B, C, S, h1, S, w1) -> (B, Si, Sj, C, h1, w1) -> (P, C, h1*w1): lane-dense.
    xp = xc.reshape(B, C, S, h1, S, w1).transpose(0, 2, 4, 1, 3, 5)
    xp = xp.reshape(P, C, hw1)

    wt = jnp.asarray(w, jnp.float32).T            # (C_in, C_out)
    b2 = jnp.asarray(b, jnp.float32).reshape(1, C)

    itemsize = jnp.dtype(x.dtype).itemsize
    pt = _pick_patch_tile(P, C * hw1 * itemsize)

    cost = pl.CostEstimate(
        flops=int(P * (2 * C * hw1 + 2 * C * C + C)),
        transcendentals=int(P * C),
        bytes_accessed=int(2 * P * C * hw1 * itemsize + (C * C + C) * 4),
    )

    out_p = pl.pallas_call(
        _multiarm_kernel,
        out_shape=jax.ShapeDtypeStruct((P, C, hw1), x.dtype),
        grid_spec=pltpu.PrefetchScalarGridSpec(
            num_scalar_prefetch=0,
            grid=(P // pt,),
            in_specs=[
                pl.BlockSpec((pt, C, hw1), lambda p: (p, 0, 0)),   # x patches
                pl.BlockSpec((C, C), lambda p: (0, 0)),            # W^T (fp32)
                pl.BlockSpec((1, C), lambda p: (0, 0)),            # bias (fp32)
            ],
            out_specs=pl.BlockSpec((pt, C, hw1), lambda p: (p, 0, 0)),
        ),
        compiler_params=pltpu.CompilerParams(
            dimension_semantics=("parallel",)),
        cost_estimate=cost,
    )(xp, wt, b2)

    # Undo the patch layout: (P, C, hw1) -> (B, C, S*h1, S*w1).
    out = out_p.reshape(B, S, S, C, h1, w1).transpose(0, 3, 1, 4, 2, 5)
    return out.reshape(B, C, S * h1, S * w1)


def multiarm_sync_reference(x, w, b, split_num):
    """Plain-JAX reference mirroring the PyTorch forward."""
    B, C, H, W = x.shape
    S = split_num
    h1, w1 = H // S, W // S
    wf = jnp.asarray(w, jnp.float32)
    bf = jnp.asarray(b, jnp.float32)
    rows = []
    for i in range(S):
        blocks = []
        for j in range(S):
            patch = x[:, :, i * h1:(i + 1) * h1, j * w1:(j + 1) * w1]
            pooled = jnp.mean(patch.astype(jnp.float32), axis=(2, 3))       # (B, C)
            atte = jax.nn.sigmoid(pooled @ wf.T + bf)                        # (B, C)
            blocks.append((patch.astype(jnp.float32)
                           * atte[:, :, None, None]).astype(x.dtype))
        rows.append(jnp.concatenate(blocks, axis=3))
    return jnp.concatenate(rows, axis=2)


if __name__ == "__main__":
    B, C, H, W = 2, 4, 16, 16
    split_num = 2

    key = jax.random.PRNGKey(0)
    kx, kw, kb = jax.random.split(key, 3)
    x = jax.random.normal(kx, (B, C, H, W), dtype=jnp.float32)
    # 1x1 conv weight (C_out, C_in) and bias (C_out,)
    w = jax.random.normal(kw, (C, C), dtype=jnp.float32) * 0.1
    b = jax.random.normal(kb, (C,), dtype=jnp.float32) * 0.1

    out = multiarm_sync_forward(x, w, b, split_num)
    out = jax.block_until_ready(out)

    ref = multiarm_sync_reference(x, w, b, split_num)
    assert out.shape == (B, C, H, W), out.shape
    assert out.dtype == x.dtype
    assert jnp.allclose(out, ref, atol=1e-5, rtol=1e-5), "mismatch vs reference"

    print("KERNEL_OK")
</pallas_src>

<mosaic_0001>
module attributes {stable_mosaic.version = 11 : i64} {
  func.func @_multiarm_kernel(%arg0: i32, %arg1: memref<8x4x64xf32, #tpu.memory_space<vmem>>, %arg2: memref<4x4xf32, #tpu.memory_space<vmem>>, %arg3: memref<1x4xf32, #tpu.memory_space<vmem>>, %arg4: memref<8x4x64xf32, #tpu.memory_space<vmem>>) attributes {dimension_semantics = [#tpu.dimension_semantics<parallel>], iteration_bounds = array<i64: 1>, scalar_prefetch = 0 : i64, scratch_operands = 0 : i64, tpu.core_type = #tpu.core_type<tc>, window_params = [{transform_indices = @transform_0, window_bounds = array<i64: 8, 4, 64>}, {pipeline_mode = #tpu.pipeline_mode<synchronous>, transform_indices = @transform_1, window_bounds = array<i64: 4, 4>}, {pipeline_mode = #tpu.pipeline_mode<synchronous>, transform_indices = @transform_2, window_bounds = array<i64: 1, 4>}, {transform_indices = @transform_3, window_bounds = array<i64: 8, 4, 64>}]} {
    %c0 = arith.constant 0 : index
    %c0_0 = arith.constant 0 : index
    %c0_1 = arith.constant 0 : index
    %0 = vector.load %arg1[%c0, %c0_0, %c0_1] : memref<8x4x64xf32, #tpu.memory_space<vmem>>, vector<8x4x64xf32>
    %cst = arith.constant dense<0.000000e+00> : vector<8x4xf32>
    %1 = vector.multi_reduction <add>, %0, %cst [2] : vector<8x4x64xf32> to vector<8x4xf32>
    %cst_2 = arith.constant 1.562500e-02 : f32
    %2 = vector.broadcast %cst_2 : f32 to vector<8x4xf32>
    %3 = arith.mulf %1, %2 : vector<8x4xf32>
    %c0_3 = arith.constant 0 : index
    %c0_4 = arith.constant 0 : index
    %4 = vector.load %arg2[%c0_3, %c0_4] : memref<4x4xf32, #tpu.memory_space<vmem>>, vector<4x4xf32>
    %cst_5 = arith.constant dense<0.000000e+00> : vector<8x4xf32>
    %5 = tpu.matmul %3, %4, %cst_5 {dimension_numbers = #tpu.dot_dimension_numbers<[1], [0], [0], [1], [0, 0, 1, 1], [], []>} : vector<8x4xf32>, vector<4x4xf32>, vector<8x4xf32> -> vector<8x4xf32>
    %c0_6 = arith.constant 0 : index
    %c0_7 = arith.constant 0 : index
    %6 = vector.load %arg3[%c0_6, %c0_7] : memref<1x4xf32, #tpu.memory_space<vmem>>, vector<1x4xf32>
    %7 = vector.broadcast %6 : vector<1x4xf32> to vector<8x4xf32>
    %8 = arith.addf %5, %7 : vector<8x4xf32>
    %9 = arith.negf %8 : vector<8x4xf32>
    %10 = math.exp %9 : vector<8x4xf32>
    %cst_8 = arith.constant 1.000000e+00 : f32
    %11 = vector.broadcast %cst_8 : f32 to vector<8x4xf32>
    %12 = arith.addf %11, %10 : vector<8x4xf32>
    %13 = arith.divf %11, %12 : vector<8x4xf32>
    %14 = vector.shape_cast %13 : vector<8x4xf32> to vector<8x4x1xf32>
    %15 = vector.broadcast %14 : vector<8x4x1xf32> to vector<8x4x64xf32>
    %16 = arith.mulf %0, %15 : vector<8x4x64xf32>
    %c0_9 = arith.constant 0 : index
    %c0_10 = arith.constant 0 : index
    %c0_11 = arith.constant 0 : index
    %17 = vector.load %arg4[%c0_9, %c0_10, %c0_11] : memref<8x4x64xf32, #tpu.memory_space<vmem>>, vector<8x4x64xf32>
    tpu.vector_store %arg4[%c0_9, %c0_10, %c0_11], %16 {strides = array<i32>} : memref<8x4x64xf32, #tpu.memory_space<vmem>>, vector<8x4x64xf32>,
    return
  }
  func.func @transform_0(%arg0: i32) -> (i32, i32, i32) {
    %c0_i32 = arith.constant 0 : i32
    %c0_i32_0 = arith.constant 0 : i32
    %c0_i32_1 = arith.constant 0 : i32
    return %arg0, %c0_i32, %c0_i32_0 : i32, i32, i32
  }
  func.func @transform_1(%arg0: i32) -> (i32, i32) {
    %c0_i32 = arith.constant 0 : i32
    %c0_i32_0 = arith.constant 0 : i32
    %c0_i32_1 = arith.constant 0 : i32
    return %c0_i32, %c0_i32_0 : i32, i32
  }
  func.func @transform_2(%arg0: i32) -> (i32, i32) {
    %c0_i32 = arith.constant 0 : i32
    %c0_i32_0 = arith.constant 0 : i32
    %c0_i32_1 = arith.constant 0 : i32
    return %c0_i32, %c0_i32_0 : i32, i32
  }
  func.func @transform_3(%arg0: i32) -> (i32, i32, i32) {
    %c0_i32 = arith.constant 0 : i32
    %c0_i32_0 = arith.constant 0 : i32
    %c0_i32_1 = arith.constant 0 : i32
    return %arg0, %c0_i32, %c0_i32_0 : i32, i32, i32
  }
}

</mosaic_0001>

<bundles_post_ra>
// kernel: multiarm_sync_forward.1
= control target key start
LH: loop header
LB: loop body
LE: loop exit
PB: predicated region body
PF: predicated region fallthrough
CT: control target
= control target key end

     0   :  { %vm22_vm0 = vcmask 519168   ;;  %vm122_vm1 = vcmask 1043456   ;;  %v295_v16 = vmov 0.0   ;;  %vm296_vm2 = vmmov 0   ;;  %s430_s0 = inlined_call_operand.vmem [shape: f32[8,4,64], index: 0, kind: input, shape index: {}]   ;;  %s431_s1 = inlined_call_operand.vmem [shape: f32[4,4], index: 1, kind: input, shape index: {}]   ;;  %s432_s2 = inlined_call_operand.vmem [shape: f32[1,4], index: 2, kind: input, shape index: {}]   ;;  %s433_s3 = inlined_call_operand.vmem [shape: f32[8,4,64], index: 3, kind: output, shape index: {}]  }
   0x1   :  { %v320_v0 = vld [vmem:[%s430_s0] sm:$0xf]  ;;  %v325_v1 = vld [vmem:[%s430_s0 + $0x8] sm:$0xf]  ;;  %v330_v2 = vld [vmem:[%s430_s0 + $0x4] sm:$0xf]  ;;  %284 = vmatprep.subr.mxu0 %v295_v16  ;;  %286 = vmatprep.mubr.msk.f32.mxu0 %vm296_vm2, %v295_v16  ;;  %v71_v18 = vlaneseq }
   0x2   :  { %v23_v3 = vsel %vm22_vm0, %v320_v0, 0.0  ;;  %v29_v4 = vsel %vm22_vm0, %v325_v1, 0.0  ;;  %v339_v5 = vld [vmem:[%s430_s0 + $0xc] sm:$0xf]  ;;  %v26_v6 = vsel %vm22_vm0, %v330_v2, 0.0  ;;  %vm105_vm3 = vcmask 1041409  }
   0x3   :  { %24 = vadd.xlane.f32.xlu0 %v23_v3  ;;  %30 = vadd.xlane.f32.xlu1 %v29_v4  ;;  %v32_v7 = vsel %vm22_vm0, %v339_v5, 0.0  ;;  %v348_v8 = vld [vmem:[%s430_s0 + $0x10] sm:$0xf]  ;;  %v353_v9 = vld [vmem:[%s430_s0 + $0x14] sm:$0xf]  ;;  %v72_v19 = vand.u32 127, %v71_v18 }
   0x4   :  { %v35_v10 = vsel %vm22_vm0, %v348_v8, 0.0  ;;  %v38_v11 = vsel %vm22_vm0, %v353_v9, 0.0  ;;  %v362_v12 = vld [vmem:[%s430_s0 + $0x18] sm:$0xf]  ;;  %v367_v13 = vld [vmem:[%s430_s0 + $0x1c] sm:$0xf] }
   0x5   :  { %v41_v14 = vsel %vm22_vm0, %v362_v12, 0.0  ;;  %v44_v15 = vsel %vm22_vm0, %v367_v13, 0.0  ;;  %v55_v17 = vld [vmem:[%s431_s1] sm:$0xf]  ;;  %v376_v20 = vshrl.u32 %v71_v18, 7  ;;  %vm107_vm4 = vcmask 1042434  }
   0x6   :  { %285 = vmatpush3.msk.msra.mxu0 %vm122_vm1, %v55_v17  ;;  %vm109_vm5 = vcmask 1043459   ;;  %vm111_vm6 = vcmask 1044484   ;;  %vm113_vm7 = vcmask 1045509   ;;  %vm115_vm8 = vcmask 1046534   ;;  %v278_v53 = vld [vmem:[%s432_s2] ss:$0 sm:$0xff] }
   0x7   :  { %27 = vadd.xlane.f32.xlu0 %v26_v6  ;;  %33 = vadd.xlane.f32.xlu1 %v32_v7  ;;  %v75_v23 = vsub.s32 %v72_v19, %v376_v20  ;;  %vm117_vm9 = vcmask 1047559   ;;  %vm119_vm10 = vcmask 31744   ;;  %v211_v60 = vsub.s32 1, %v376_v20 }
   0x8   :  { %v204_v61 = vsub.s32 0, %v376_v20  ;;  %v218_v4 = vsub.s32 2, %v376_v20  ;;  %v232_v6 = vsub.s32 4, %v376_v20  ;;  %v239_v17 = vsub.s32 5, %v376_v20 }
   0x9   :  { %v253_v19 = vsub.s32 7, %v376_v20 }
   0xb   :  { %36 = vadd.xlane.f32.xlu0 %v35_v10  ;;  %39 = vadd.xlane.f32.xlu1 %v38_v11  ;;  %v225_v11 = vsub.s32 3, %v376_v20 }
   0xf   :  { %42 = vadd.xlane.f32.xlu0 %v41_v14  ;;  %45 = vadd.xlane.f32.xlu1 %v44_v15  ;;  %v246_v14 = vsub.s32 6, %v376_v20 }
  0x90   :  { %v25_v21 = vpop.xlane.xlu0 %24  ;;  %v31_v22 = vpop.xlane.xlu1 %30 }
  0x91   :  { %v47_v24 = vmul.f32 0.015625, %v25_v21  ;;  %v49_v25 = vmul.f32 0.015625, %v31_v22 }
  0x93   :  { %v76_v30 = vrot.slane %v47_v24, %v75_v23  ;;  %v84_v33 = vrot.slane %v49_v25, %v75_v23 }
  0x94   :  { %v28_v26 = vpop.xlane.xlu0 %27  ;;  %v34_v27 = vpop.xlane.xlu1 %33 }
  0x95   :  { %v48_v28 = vmul.f32 0.015625, %v28_v26  ;;  %v50_v29 = vmul.f32 0.015625, %v34_v27 }
  0x97   :  { %v80_v31 = vrot.slane %v48_v28, %v75_v23  ;;  %v88_v32 = vrot.slane %v50_v29, %v75_v23 }
  0x98   :  { %v37_v34 = vpop.xlane.xlu0 %36  ;;  %v40_v35 = vpop.xlane.xlu1 %39 }
  0x99   :  { %v106_v36 = vsel %vm105_vm3, %v80_v31, %v76_v30  ;;  %v51_v37 = vmul.f32 0.015625, %v37_v34  ;;  %v52_v38 = vmul.f32 0.015625, %v40_v35 }
  0x9a   :  { %v108_v39 = vsel %vm107_vm4, %v84_v33, %v106_v36 }
  0x9b   :  { %v110_v40 = vsel %vm109_vm5, %v88_v32, %v108_v39  ;;  %v92_v41 = vrot.slane %v51_v37, %v75_v23  ;;  %v96_v42 = vrot.slane %v52_v38, %v75_v23 }
  0x9c   :  { %v43_v43 = vpop.xlane.xlu0 %42  ;;  %v46_v44 = vpop.xlane.xlu1 %45 }
  0x9d   :  { %v112_v45 = vsel %vm111_vm6, %v92_v41, %v110_v40  ;;  %v53_v46 = vmul.f32 0.015625, %v43_v43  ;;  %v54_v47 = vmul.f32 0.015625, %v46_v44 }
  0x9e   :  { %v114_v50 = vsel %vm113_vm7, %v96_v42, %v112_v45 }
  0x9f   :  { %v100_v48 = vrot.slane %v53_v46, %v75_v23  ;;  %v104_v49 = vrot.slane %v54_v47, %v75_v23 }
  0xa1   :  { %v116_v51 = vsel %vm115_vm8, %v100_v48, %v114_v50 }
  0xa2   :  { %v118_v52 = vsel %vm117_vm9, %v104_v49, %v116_v51 }
  0xa3   :  { %287 = vmatmul.mubr.msk.f32.vlgmr.msra.gmra.mrb[0].mxu0 %vm119_vm10, %v118_v52 }
 0x176   :  { %v192_v54 = vpop.f32.mrb[0].mxu0 }
 0x177   :  { %v193_v55 = vadd.f32 %v278_v53, %v192_v54  ;;  %v288_v56 = vpop.f32.mrb[1].mxu0 }
 0x179   :  { %v281_v57 = vmul.f32 -1.442695, %v193_v55 }
 0x17b   :  { %291 = vpow2.f32 %v281_v57 }
 0x185   :  { %v292_v58 = vpop.eup %291 }
 0x186   :  { %v199_v59 = vadd.f32 1.0, %v292_v58 }
 0x188   :  { %293 = vrcp.f32 %v199_v59 }
 0x192   :  { %v294_v62 = vpop.eup %293 }
 0x193   :  { %v212_v63 = vrot.slane %v294_v62, %v211_v60  ;;  %v205_v3 = vrot.slane %v294_v62, %v204_v61  ;;  %v219_v7 = vrot.slane %v294_v62, %v218_v4  ;;  %v233_v10 = vrot.slane %v294_v62, %v232_v6 }
 0x194   :  { %v226_v15 = vrot.slane %v294_v62, %v225_v11  ;;  %v247_v16 = vrot.slane %v294_v62, %v246_v14  ;;  %v240_v18 = vrot.slane %v294_v62, %v239_v17  ;;  %v254_v21 = vrot.slane %v294_v62, %v253_v19 }
 0x195   :  { %214 = vbcast.lane.b32.xlu1 %v212_v63, 256  ;;  %207 = vbcast.lane.b32.xlu0 %v205_v3, 256 }
 0x199   :  { %221 = vbcast.lane.b32.xlu1 %v219_v7, 256  ;;  %235 = vbcast.lane.b32.xlu0 %v233_v10, 256 }
 0x19d   :  { %228 = vbcast.lane.b32.xlu1 %v226_v15, 256  ;;  %249 = vbcast.lane.b32.xlu0 %v247_v16, 256 }
 0x1a1   :  { %242 = vbcast.lane.b32.xlu1 %v240_v18, 256 }
 0x1a5   :  { %256 = vbcast.lane.b32.xlu1 %v254_v21, 256 }
 0x207   :  { %v215_v22 = vpop.permute.xlu1 %214  ;;  %v208_v23 = vpop.permute.xlu0 %207 }
 0x208   :  { %v259_v24 = vmul.f32 %v215_v22, %v330_v2  ;;  %v258_v25 = vmul.f32 %v208_v23, %v320_v0 }
 0x20a   :  { %267 = vst.msk [vmem:[%s433_s3 + $0x4] sm:$0xf] %vm22_vm0, %v259_v24  ;;  %266 = vst.msk [vmem:[%s433_s3] sm:$0xf] %vm22_vm0, %v258_v25 }
 0x20b   :  { %v222_v20 = vpop.permute.xlu1 %221  ;;  %v236_v26 = vpop.permute.xlu0 %235 }
 0x20c   :  { %v260_v27 = vmul.f32 %v222_v20, %v325_v1  ;;  %v262_v28 = vmul.f32 %v236_v26, %v348_v8 }
 0x20e   :  { %268 = vst.msk [vmem:[%s433_s3 + $0x8] sm:$0xf] %vm22_vm0, %v260_v27  ;;  %270 = vst.msk [vmem:[%s433_s3 + $0x10] sm:$0xf] %vm22_vm0, %v262_v28 }
 0x20f   :  { %v229_v0 = vpop.permute.xlu1 %228  ;;  %v250_v2 = vpop.permute.xlu0 %249 }
 0x210   :  { %v261_v29 = vmul.f32 %v229_v0, %v339_v5  ;;  %v264_v30 = vmul.f32 %v250_v2, %v362_v12 }
 0x212   :  { %269 = vst.msk [vmem:[%s433_s3 + $0xc] sm:$0xf] %vm22_vm0, %v261_v29  ;;  %272 = vst.msk [vmem:[%s433_s3 + $0x18] sm:$0xf] %vm22_vm0, %v264_v30 }
 0x213   :  { %v243_v1 = vpop.permute.xlu1 %242 }
 0x214   :  { %v263_v8 = vmul.f32 %v243_v1, %v353_v9 }
 0x216   :  { %271 = vst.msk [vmem:[%s433_s3 + $0x14] sm:$0xf] %vm22_vm0, %v263_v8 }
 0x217   :  { %v257_v5 = vpop.permute.xlu1 %256 }
 0x218   :  { %v265_v12 = vmul.f32 %v257_v5, %v367_v13 }
 0x21a   :  { %273 = vst.msk [vmem:[%s433_s3 + $0x1c] sm:$0xf] %vm22_vm0, %v265_v12 }

</bundles_post_ra>
